<compile_context>
chip_gen: v7x
topology: tpu7x:2x2x1
jax: 0.10.0
libtpu: 0.0.40
codegen_flags: <defaults>
</compile_context>

<pallas_src>
import numpy as np
import jax
import jax.numpy as jnp
from jax.experimental import pallas as pl
from jax.experimental.pallas import tpu as pltpu

# ----------------------------- configuration --------------------------------
# mirrors opt['diffusion'] / opt['denoise_fn'] of the PyTorch module
NUM_TIMESTEPS = 8          # opt['diffusion']['time_step']
KERNEL_SIZE   = 3          # opt['diffusion']['degradation']['blur_size']
KERNEL_STD    = 0.5        # opt['diffusion']['degradation']['blur_std']
BLUR_ROUTINE  = "Incremental"
HID           = 128        # hidden width of the synthetic denoise_fn

B, C, H, W = 4, 1, 16, 16  # gaussian kernels are Conv2d(1,1,...) -> C must be 1
HW = H * W


# ----------------------- parameter construction (glue) ----------------------
def gaussian_kernel_2d(ks: int, sigma: float) -> np.ndarray:
    """kornia/tgm get_gaussian_kernel2d for odd ks (separable, sums to 1)."""
    x = np.arange(ks, dtype=np.float64) - ks // 2
    g = np.exp(-(x ** 2) / (2.0 * sigma ** 2))
    g = g / g.sum()
    return np.outer(g, g)


def circulant_blur_matrix(k2d: np.ndarray, h: int, w: int) -> np.ndarray:
    """(H*W, H*W) matrix M s.t. (M @ img.flatten()) == depthwise conv2d with
    circular padding (PyTorch cross-correlation convention)."""
    ks = k2d.shape[0]
    pad = (ks - 1) // 2
    M = np.zeros((h, w, h, w), dtype=np.float64)
    hh = np.arange(h)
    ww = np.arange(w)
    for dy in range(ks):
        for dx in range(ks):
            src_h = (hh + dy - pad) % h
            src_w = (ww + dx - pad) % w
            M[hh[:, None], ww[None, :], src_h[:, None], src_w[None, :]] += k2d[dy, dx]
    return M.reshape(h * w, h * w)


def build_blur_matrices() -> np.ndarray:
    """Per-step transposed circulant blur matrices: x_row @ mT[i] == blur_i(img)."""
    mats = []
    for i in range(NUM_TIMESTEPS):
        if BLUR_ROUTINE == "Incremental":
            std = KERNEL_STD * (i + 1)
        elif BLUR_ROUTINE == "Constant":
            std = KERNEL_STD
        elif BLUR_ROUTINE == "Exponential":
            std = float(np.exp(KERNEL_STD * i))
        else:
            raise NotImplementedError(BLUR_ROUTINE)
        k2d = gaussian_kernel_2d(KERNEL_SIZE, std)
        mats.append(circulant_blur_matrix(k2d, H, W).T)
    return np.stack(mats, axis=0)  # (T, HW, HW) float64


def build_cumulative_blur_matrices(mT: np.ndarray) -> np.ndarray:
    """M_cumT[i] = mT[0] @ mT[1] @ ... @ mT[i]  (f64 accumulation on host), so
    x_row @ M_cumT[i] == q_sample blur level i applied sequentially."""
    cum = np.eye(HW, dtype=np.float64)
    out = []
    for i in range(NUM_TIMESTEPS):
        cum = cum @ mT[i]
        out.append(cum)
    return np.stack(out, axis=0).astype(np.float32)  # (T, HW, HW) f32


# ------------------------------- wrapper + kernel ----------------------------
def gaussian_diffusion_forward(x_start, t, mcum_bf16, w1, emb, w2):
    """x_start: (B, C, H, W) NCHW float32 ; t: (B,) int32 in [0, T)."""
    b, c, h, w = x_start.shape
    hw = h * w
    bc = b * c
    nT = mcum_bf16.shape[0]

    x2 = x_start.reshape(bc, hw).astype(jnp.float32)
    # clamp so the in-kernel SMEM-driven select can never read out of bounds
    t_clamped = jnp.clip(t.astype(jnp.int32), 0, nT - 1)
    # gather the (tiny) timestep embeddings in the wrapper; one row per image row
    emb_g = jnp.take(emb, t_clamped, axis=0).astype(jnp.float32)      # (B, HID)
    if c > 1:
        emb_g = jnp.repeat(emb_g, c, axis=0)                          # (B*C, HID)

    def diffusion_kernel(t_sref, x_ref, mcum_ref, emb_ref, w1_ref, w2_ref,
                         blur_ref, recon_ref):
        # t_sref   : (B,) i32 SMEM      prefetched timesteps
        # x_ref    : (BC, HW) f32       all flattened image rows
        # mcum_ref : (T, HW, HW) bf16   ALL cumulative blur matrices, VMEM-resident
        # emb_ref  : (BC, HID) f32      per-row timestep embeddings (pre-gathered)
        # w1_ref   : (HW, HID) bf16 ; w2_ref : (HID, HW) bf16   denoiser weights
        x_bf = x_ref[...].astype(jnp.bfloat16)                        # (BC, HW)

        # q_sample: per row, one matmul against the row's cumulative blur matrix,
        # selected by a dynamic leading-dim index into the resident VMEM block.
        rows = []
        for r in range(bc):
            tb = t_sref[r // c]                                       # timestep of row r
            m = mcum_ref[tb]                                          # (HW, HW) bf16
            rows.append(jnp.dot(x_bf[r:r + 1, :], m,
                                preferred_element_type=jnp.float32))  # (1, HW) f32
        blur = jnp.concatenate(rows, axis=0)                          # (BC, HW) f32
        blur_ref[...] = blur

        # synthetic denoise_fn(x_blur, t): timestep-conditioned 2-layer MLP,
        # batched over all BC rows in single matmuls.
        hid = jnp.dot(blur.astype(jnp.bfloat16), w1_ref[...],
                      preferred_element_type=jnp.float32) + emb_ref[...]   # (BC, HID)
        hid = jnp.maximum(hid, 0.0)
        recon_ref[...] = jnp.dot(hid.astype(jnp.bfloat16), w2_ref[...],
                                 preferred_element_type=jnp.float32)       # (BC, HW)

    flops = bc * (2 * hw * hw + 2 * hw * HID + 2 * HID * hw)
    bytes_accessed = (nT * hw * hw * 2             # resident cumulative blur mats (bf16)
                      + (hw * HID + HID * hw) * 2  # w1 + w2 (bf16)
                      + 3 * bc * hw * 4            # x in + two f32 outputs
                      + bc * HID * 4 + b * 4)      # emb rows + t

    grid_spec = pltpu.PrefetchScalarGridSpec(
        num_scalar_prefetch=1,            # t lives in SMEM, read inside the kernel
        grid=(1,),                        # single grid step: no per-step overhead
        in_specs=[
            pl.BlockSpec((bc, hw), lambda i, t_ref: (0, 0)),           # x (all rows)
            pl.BlockSpec((nT, hw, hw), lambda i, t_ref: (0, 0, 0)),    # all M_cum
            pl.BlockSpec((bc, HID), lambda i, t_ref: (0, 0)),          # emb (gathered)
            pl.BlockSpec((hw, HID), lambda i, t_ref: (0, 0)),          # w1
            pl.BlockSpec((HID, hw), lambda i, t_ref: (0, 0)),          # w2
        ],
        out_specs=[
            pl.BlockSpec((bc, hw), lambda i, t_ref: (0, 0)),           # x_blur
            pl.BlockSpec((bc, hw), lambda i, t_ref: (0, 0)),           # x_recon
        ],
    )

    blur2, recon2 = pl.pallas_call(
        diffusion_kernel,
        out_shape=(
            jax.ShapeDtypeStruct((bc, hw), jnp.float32),
            jax.ShapeDtypeStruct((bc, hw), jnp.float32),
        ),
        grid_spec=grid_spec,
        compiler_params=pltpu.CompilerParams(
            dimension_semantics=("arbitrary",),  # 1 step: no megacore split needed
            vmem_limit_bytes=16 << 20,           # actual need ~3 MiB incl. buffering
        ),
        cost_estimate=pl.CostEstimate(
            flops=flops, transcendentals=0, bytes_accessed=bytes_accessed),
    )(t_clamped, x2, mcum_bf16, emb_g, w1, w2)

    return blur2.reshape(b, c, h, w), recon2.reshape(b, c, h, w)

    # TODO(synk): condition_dc (fftn/fftshift data-consistency) is off this
    # config's forward path (is_dc=False) and has no clean Pallas equivalent.


# --------------------------------- main ---------------------------------------
if __name__ == "__main__":
    key = jax.random.PRNGKey(0)
    k_x, k_t, k_w1, k_w2, k_emb = jax.random.split(key, 5)

    # deterministic parameters (cumulative blur matrices precomposed on host)
    mT_np = build_blur_matrices()                         # (T, HW, HW) f64 per-step
    mcum_np = build_cumulative_blur_matrices(mT_np)       # (T, HW, HW) f32 cumulative
    mcum = jnp.asarray(mcum_np).astype(jnp.bfloat16)      # bf16: halve HBM traffic

    w1 = (jax.random.normal(k_w1, (HW, HID), jnp.float32) / np.sqrt(HW)).astype(jnp.bfloat16)
    w2 = (jax.random.normal(k_w2, (HID, HW), jnp.float32) / np.sqrt(HID)).astype(jnp.bfloat16)
    emb = jax.random.normal(k_emb, (NUM_TIMESTEPS, HID), jnp.float32) * 0.02

    # inputs (forward draws t = randint(0, T, (B,)) internally; done here as glue)
    x_start = jax.random.normal(k_x, (B, C, H, W), jnp.float32)
    t = jax.random.randint(k_t, (B,), 0, NUM_TIMESTEPS, dtype=jnp.int32)

    x_blur, x_recon = gaussian_diffusion_forward(x_start, t, mcum, w1, emb, w2)
    jax.block_until_ready((x_blur, x_recon))

    # reference q_sample: sequential high-precision blurs + per-batch selection
    x_np = np.asarray(x_start).reshape(B, C, HW).astype(np.float64)
    t_np = np.asarray(t)
    ref = np.zeros_like(x_np)
    for bi in range(B):
        r = x_np[bi]
        for i in range(int(t_np[bi]) + 1):
            r = r @ mT_np[i]
        ref[bi] = r
    ref = ref.reshape(B, C, H, W).astype(np.float32)

    assert x_blur.shape == (B, C, H, W) and x_recon.shape == (B, C, H, W)
    assert bool(jnp.all(jnp.isfinite(x_blur))) and bool(jnp.all(jnp.isfinite(x_recon)))
    np.testing.assert_allclose(np.asarray(x_blur), ref, atol=8e-2, rtol=0)
    print("KERNEL_OK")
</pallas_src>

<mosaic_0001>
module attributes {stable_mosaic.version = 11 : i64} {
  func.func @diffusion_kernel(%arg0: i32, %arg1: memref<4xi32, #tpu.memory_space<smem>>, %arg2: memref<4x256xf32, #tpu.memory_space<vmem>>, %arg3: memref<8x256x256xbf16, #tpu.memory_space<vmem>>, %arg4: memref<4x128xf32, #tpu.memory_space<vmem>>, %arg5: memref<256x128xbf16, #tpu.memory_space<vmem>>, %arg6: memref<128x256xbf16, #tpu.memory_space<vmem>>, %arg7: memref<4x256xf32, #tpu.memory_space<vmem>>, %arg8: memref<4x256xf32, #tpu.memory_space<vmem>>) attributes {dimension_semantics = [#tpu.dimension_semantics<arbitrary>], iteration_bounds = array<i64: 1>, scalar_prefetch = 1 : i64, scratch_operands = 0 : i64, tpu.core_type = #tpu.core_type<tc>, window_params = [{pipeline_mode = #tpu.pipeline_mode<synchronous>, transform_indices = @transform_0, window_bounds = array<i64: 4, 256>}, {pipeline_mode = #tpu.pipeline_mode<synchronous>, transform_indices = @transform_1, window_bounds = array<i64: 8, 256, 256>}, {pipeline_mode = #tpu.pipeline_mode<synchronous>, transform_indices = @transform_2, window_bounds = array<i64: 4, 128>}, {pipeline_mode = #tpu.pipeline_mode<synchronous>, transform_indices = @transform_3, window_bounds = array<i64: 256, 128>}, {pipeline_mode = #tpu.pipeline_mode<synchronous>, transform_indices = @transform_4, window_bounds = array<i64: 128, 256>}, {pipeline_mode = #tpu.pipeline_mode<synchronous>, transform_indices = @transform_5, window_bounds = array<i64: 4, 256>}, {pipeline_mode = #tpu.pipeline_mode<synchronous>, transform_indices = @transform_6, window_bounds = array<i64: 4, 256>}]} {
    %c0 = arith.constant 0 : index
    %c0_0 = arith.constant 0 : index
    %0 = vector.load %arg2[%c0, %c0_0] : memref<4x256xf32, #tpu.memory_space<vmem>>, vector<4x256xf32>
    %1 = arith.truncf %0 : vector<4x256xf32> to vector<4x256xbf16>
    %c0_1 = arith.constant 0 : index
    %2 = memref.load %arg1[%c0_1] : memref<4xi32, #tpu.memory_space<smem>>
    %3 = arith.index_cast %2 : i32 to index
    %c0_2 = arith.constant 0 : index
    %c0_3 = arith.constant 0 : index
    %4 = vector.load %arg3[%3, %c0_2, %c0_3] : memref<8x256x256xbf16, #tpu.memory_space<vmem>>, vector<1x256x256xbf16>
    %5 = vector.shape_cast %4 : vector<1x256x256xbf16> to vector<256x256xbf16>
    %6 = vector.extract_strided_slice %1 {offsets = [0, 0], sizes = [1, 256], strides = [1, 1]} : vector<4x256xbf16> to vector<1x256xbf16>
    %cst = arith.constant dense<0.000000e+00> : vector<1x256xf32>
    %7 = tpu.matmul %6, %5, %cst {dimension_numbers = #tpu.dot_dimension_numbers<[1], [0], [0], [1], [0, 0, 1, 1], [], []>} : vector<1x256xbf16>, vector<256x256xbf16>, vector<1x256xf32> -> vector<1x256xf32>
    %c1 = arith.constant 1 : index
    %8 = memref.load %arg1[%c1] : memref<4xi32, #tpu.memory_space<smem>>
    %9 = arith.index_cast %8 : i32 to index
    %c0_4 = arith.constant 0 : index
    %c0_5 = arith.constant 0 : index
    %10 = vector.load %arg3[%9, %c0_4, %c0_5] : memref<8x256x256xbf16, #tpu.memory_space<vmem>>, vector<1x256x256xbf16>
    %11 = vector.shape_cast %10 : vector<1x256x256xbf16> to vector<256x256xbf16>
    %12 = vector.extract_strided_slice %1 {offsets = [1, 0], sizes = [1, 256], strides = [1, 1]} : vector<4x256xbf16> to vector<1x256xbf16>
    %cst_6 = arith.constant dense<0.000000e+00> : vector<1x256xf32>
    %13 = tpu.matmul %12, %11, %cst_6 {dimension_numbers = #tpu.dot_dimension_numbers<[1], [0], [0], [1], [0, 0, 1, 1], [], []>} : vector<1x256xbf16>, vector<256x256xbf16>, vector<1x256xf32> -> vector<1x256xf32>
    %c2 = arith.constant 2 : index
    %14 = memref.load %arg1[%c2] : memref<4xi32, #tpu.memory_space<smem>>
    %15 = arith.index_cast %14 : i32 to index
    %c0_7 = arith.constant 0 : index
    %c0_8 = arith.constant 0 : index
    %16 = vector.load %arg3[%15, %c0_7, %c0_8] : memref<8x256x256xbf16, #tpu.memory_space<vmem>>, vector<1x256x256xbf16>
    %17 = vector.shape_cast %16 : vector<1x256x256xbf16> to vector<256x256xbf16>
    %18 = vector.extract_strided_slice %1 {offsets = [2, 0], sizes = [1, 256], strides = [1, 1]} : vector<4x256xbf16> to vector<1x256xbf16>
    %cst_9 = arith.constant dense<0.000000e+00> : vector<1x256xf32>
    %19 = tpu.matmul %18, %17, %cst_9 {dimension_numbers = #tpu.dot_dimension_numbers<[1], [0], [0], [1], [0, 0, 1, 1], [], []>} : vector<1x256xbf16>, vector<256x256xbf16>, vector<1x256xf32> -> vector<1x256xf32>
    %c3 = arith.constant 3 : index
    %20 = memref.load %arg1[%c3] : memref<4xi32, #tpu.memory_space<smem>>
    %21 = arith.index_cast %20 : i32 to index
    %c0_10 = arith.constant 0 : index
    %c0_11 = arith.constant 0 : index
    %22 = vector.load %arg3[%21, %c0_10, %c0_11] : memref<8x256x256xbf16, #tpu.memory_space<vmem>>, vector<1x256x256xbf16>
    %23 = vector.shape_cast %22 : vector<1x256x256xbf16> to vector<256x256xbf16>
    %24 = vector.extract_strided_slice %1 {offsets = [3, 0], sizes = [1, 256], strides = [1, 1]} : vector<4x256xbf16> to vector<1x256xbf16>
    %cst_12 = arith.constant dense<0.000000e+00> : vector<1x256xf32>
    %25 = tpu.matmul %24, %23, %cst_12 {dimension_numbers = #tpu.dot_dimension_numbers<[1], [0], [0], [1], [0, 0, 1, 1], [], []>} : vector<1x256xbf16>, vector<256x256xbf16>, vector<1x256xf32> -> vector<1x256xf32>
    %26 = tpu.concatenate %7, %13, %19, %25 in 0 : vector<1x256xf32>, vector<1x256xf32>, vector<1x256xf32>, vector<1x256xf32> -> vector<4x256xf32>
    %c0_13 = arith.constant 0 : index
    %c0_14 = arith.constant 0 : index
    %27 = vector.load %arg7[%c0_13, %c0_14] : memref<4x256xf32, #tpu.memory_space<vmem>>, vector<4x256xf32>
    tpu.vector_store %arg7[%c0_13, %c0_14], %26 {strides = array<i32>} : memref<4x256xf32, #tpu.memory_space<vmem>>, vector<4x256xf32>,
    %28 = arith.truncf %26 : vector<4x256xf32> to vector<4x256xbf16>
    %c0_15 = arith.constant 0 : index
    %c0_16 = arith.constant 0 : index
    %29 = vector.load %arg5[%c0_15, %c0_16] : memref<256x128xbf16, #tpu.memory_space<vmem>>, vector<256x128xbf16>
    %cst_17 = arith.constant dense<0.000000e+00> : vector<4x128xf32>
    %30 = tpu.matmul %28, %29, %cst_17 {dimension_numbers = #tpu.dot_dimension_numbers<[1], [0], [0], [1], [0, 0, 1, 1], [], []>} : vector<4x256xbf16>, vector<256x128xbf16>, vector<4x128xf32> -> vector<4x128xf32>
    %c0_18 = arith.constant 0 : index
    %c0_19 = arith.constant 0 : index
    %31 = vector.load %arg4[%c0_18, %c0_19] : memref<4x128xf32, #tpu.memory_space<vmem>>, vector<4x128xf32>
    %32 = arith.addf %30, %31 : vector<4x128xf32>
    %cst_20 = arith.constant 0.000000e+00 : f32
    %33 = vector.broadcast %cst_20 : f32 to vector<4x128xf32>
    %34 = arith.maximumf %32, %33 : vector<4x128xf32>
    %35 = arith.truncf %34 : vector<4x128xf32> to vector<4x128xbf16>
    %c0_21 = arith.constant 0 : index
    %c0_22 = arith.constant 0 : index
    %36 = vector.load %arg6[%c0_21, %c0_22] : memref<128x256xbf16, #tpu.memory_space<vmem>>, vector<128x256xbf16>
    %cst_23 = arith.constant dense<0.000000e+00> : vector<4x256xf32>
    %37 = tpu.matmul %35, %36, %cst_23 {dimension_numbers = #tpu.dot_dimension_numbers<[1], [0], [0], [1], [0, 0, 1, 1], [], []>} : vector<4x128xbf16>, vector<128x256xbf16>, vector<4x256xf32> -> vector<4x256xf32>
    %c0_24 = arith.constant 0 : index
    %c0_25 = arith.constant 0 : index
    %38 = vector.load %arg8[%c0_24, %c0_25] : memref<4x256xf32, #tpu.memory_space<vmem>>, vector<4x256xf32>
    tpu.vector_store %arg8[%c0_24, %c0_25], %37 {strides = array<i32>} : memref<4x256xf32, #tpu.memory_space<vmem>>, vector<4x256xf32>,
    return
  }
  func.func @transform_0(%arg0: i32, %arg1: memref<4xi32, #tpu.memory_space<smem>>) -> (i32, i32) {
    %c0_i32 = arith.constant 0 : i32
    %c0_i32_0 = arith.constant 0 : i32
    %c0_i32_1 = arith.constant 0 : i32
    return %c0_i32, %c0_i32_0 : i32, i32
  }
  func.func @transform_1(%arg0: i32, %arg1: memref<4xi32, #tpu.memory_space<smem>>) -> (i32, i32, i32) {
    %c0_i32 = arith.constant 0 : i32
    %c0_i32_0 = arith.constant 0 : i32
    %c0_i32_1 = arith.constant 0 : i32
    %c0_i32_2 = arith.constant 0 : i32
    return %c0_i32, %c0_i32_0, %c0_i32_1 : i32, i32, i32
  }
  func.func @transform_2(%arg0: i32, %arg1: memref<4xi32, #tpu.memory_space<smem>>) -> (i32, i32) {
    %c0_i32 = arith.constant 0 : i32
    %c0_i32_0 = arith.constant 0 : i32
    %c0_i32_1 = arith.constant 0 : i32
    return %c0_i32, %c0_i32_0 : i32, i32
  }
  func.func @transform_3(%arg0: i32, %arg1: memref<4xi32, #tpu.memory_space<smem>>) -> (i32, i32) {
    %c0_i32 = arith.constant 0 : i32
    %c0_i32_0 = arith.constant 0 : i32
    %c0_i32_1 = arith.constant 0 : i32
    return %c0_i32, %c0_i32_0 : i32, i32
  }
  func.func @transform_4(%arg0: i32, %arg1: memref<4xi32, #tpu.memory_space<smem>>) -> (i32, i32) {
    %c0_i32 = arith.constant 0 : i32
    %c0_i32_0 = arith.constant 0 : i32
    %c0_i32_1 = arith.constant 0 : i32
    return %c0_i32, %c0_i32_0 : i32, i32
  }
  func.func @transform_5(%arg0: i32, %arg1: memref<4xi32, #tpu.memory_space<smem>>) -> (i32, i32) {
    %c0_i32 = arith.constant 0 : i32
    %c0_i32_0 = arith.constant 0 : i32
    %c0_i32_1 = arith.constant 0 : i32
    return %c0_i32, %c0_i32_0 : i32, i32
  }
  func.func @transform_6(%arg0: i32, %arg1: memref<4xi32, #tpu.memory_space<smem>>) -> (i32, i32) {
    %c0_i32 = arith.constant 0 : i32
    %c0_i32_0 = arith.constant 0 : i32
    %c0_i32_1 = arith.constant 0 : i32
    return %c0_i32, %c0_i32_0 : i32, i32
  }
}

</mosaic_0001>

<bundles_post_ra>
// kernel: tpu_custom_call.1
= control target key start
LH: loop header
LB: loop body
LE: loop exit
PB: predicated region body
PF: predicated region fallthrough
CT: control target
= control target key end

     0   :  { %s2342_s0 = inlined_call_operand.hbm [shape: s32[4], index: 0, kind: input, shape index: {}]   ;;  %s2343_s1 = inlined_call_operand.hbm [shape: f32[4,256], index: 1, kind: input, shape index: {}]   ;;  %s2344_s2 = inlined_call_operand.hbm [shape: bf16[8,256,256], index: 2, kind: input, shape index: {}]   ;;  %s2345_s3 = inlined_call_operand.vmem [shape: f32[4,128], index: 3, kind: input, shape index: {}]   ;;  %s2346_s4 = inlined_call_operand.hbm [shape: bf16[256,128], index: 4, kind: input, shape index: {}]   ;;  %s2347_s5 = inlined_call_operand.hbm [shape: bf16[128,256], index: 5, kind: input, shape index: {}]   ;;  %s2348_s6 = inlined_call_operand.hbm [shape: f32[4,256], index: 6, kind: output, shape index: {0}]   ;;  %s2349_s7 = inlined_call_operand.hbm [shape: f32[4,256], index: 7, kind: output, shape index: {1}]  }
   0x1   :  { %s1883_s26 = scalar_lea.hbm %s2342_s0, 16 }
   0x2   :  { %p1884_p0 = scmp.ne.s32.totalorder %s2342_s0, %s1883_s26  ;;  %p1887_p1 = scmp.lt.u32.totalorder %s1883_s26, %s2342_s0 }
   0x4   :  { %p1889_p2 = pnand %p1887_p1, %p1884_p0 }
   0x6   :  { %1892 = shalt.err (!%p1889_p2)  }
   0x7   :  { %s2037_s8 = smov [#allocation3]  }
   0x8   :  { %14 = dma.hbm_to_smem %s2342_s0, 16, %s2037_s8, [#allocation2] }
   0x9   :  { %2025 = dma.done.wait [#allocation2], 16 }
   0xa   :  { %2026 = vsyncadd [#allocation2], 4294967280 }
   0xb   :  { %16 = sfence }
   0xc   :  { %17 = vsyncpa [#allocation5], 0 }
   0xd   :  { %18 = vsyncpa [#allocation8], 0 }
   0xe   :  { %19 = vsyncpa [#allocation11], 0 }
   0xf   :  { %20 = vsyncpa [#allocation6], 0 }
  0x10   :  { %21 = vsyncpa [#allocation14], 0  ;;  %s2038_s11 = smov [#allocation7]   ;;  %s1893_s15 = scalar_lea.hbm %s2344_s2, 32768 }
  0x11   :  { %s37_s12 = sshll.u32 %s2038_s11, 4  ;;  %p1894_p3 = scmp.ne.s32.totalorder %s2344_s2, %s1893_s15  ;;  %s38_s12 = int_to_ptr.vmem [resolvable:$true] %s37_s12 }
  0x12   :  { %p1897_p4 = scmp.lt.u32.totalorder %s1893_s15, %s2344_s2 }
  0x14   :  { %p1899_p5 = pnand %p1897_p4, %p1894_p3 }
  0x16   :  { %1902 = shalt.err (!%p1899_p5)
}
  0x17   :  { %s1903_s19 = scalar_lea.vmem %s38_s12, 32768  ;;  %p1908_p7 = scmp.lt.s32.totalorder %s38_s12, %s38_s12 }
  0x18   :  { %p1904_p6 = scmp.ne.s32.totalorder %s38_s12, %s1903_s19  ;;  %p1909_p8 = scmp.lt.s32.totalorder %s1903_s19, %s1903_s19 }
  0x1a   :  { %p1910_p9 = por %p1909_p8, %p1908_p7 }
  0x1c   :  { %p1911_p10 = pnand %p1910_p9, %p1904_p6 }
  0x1e   :  { %1914 = shalt.err (!%p1911_p10)
}
  0x1f   :  { %s2039_s20 = smov 128   ;;  %s2040_s21 = smov 8  }
  0x20   :  { %43 = dma.hbm_to_vmem [thread:$0]  %s2344_s2, 32768, %s38_s12, [#allocation8], %s2039_s20, %s2039_s20, %s2040_s21  }
  0x21   :  { %s2041_s24 = smov [#allocation4]   ;;  %s2042_s26 = smov [#allocation9]  }
  0x22   :  { %s28_s25 = sshll.u32 %s2041_s24, 4  ;;  %s51_s27 = sshll.u32 %s2042_s26, 4  ;;  %s29_s25 = int_to_ptr.vmem [resolvable:$true] %s28_s25  ;;  %s52_s27 = int_to_ptr.vmem [resolvable:$true] %s51_s27 }
  0x23   :  { %s1915_s30 = scalar_lea.hbm %s2343_s1, 128 }
  0x24   :  { %p1916_p11 = scmp.ne.s32.totalorder %s2343_s1, %s1915_s30  ;;  %p1919_p12 = scmp.lt.u32.totalorder %s1915_s30, %s2343_s1 }
  0x26   :  { %p1921_p13 = pnand %p1919_p12, %p1916_p11 }
  0x28   :  { %1924 = shalt.err (!%p1921_p13)
}
  0x29   :  { %s1925_s2 = scalar_lea.vmem %s29_s25, 128  ;;  %p1930_p1 = scmp.lt.s32.totalorder %s29_s25, %s29_s25 }
  0x2a   :  { %p1926_p0 = scmp.ne.s32.totalorder %s29_s25, %s1925_s2  ;;  %p1931_p2 = scmp.lt.s32.totalorder %s1925_s2, %s1925_s2 }
  0x2c   :  { %p1932_p3 = por %p1931_p2, %p1930_p1 }
  0x2e   :  { %p1933_p4 = pnand %p1932_p3, %p1926_p0 }
  0x30   :  { %1936 = shalt.err (!%p1933_p4)
}
  0x31   :  { %31 = dma.hbm_to_vmem [thread:$0]  %s2343_s1, 128, %s29_s25, [#allocation5]  }
  0x32   :  { %s1937_s16 = scalar_lea.hbm %s2346_s4, 2048 }
  0x33   :  { %p1938_p5 = scmp.ne.s32.totalorder %s2346_s4, %s1937_s16  ;;  %p1941_p6 = scmp.lt.u32.totalorder %s1937_s16, %s2346_s4 }
  0x35   :  { %p1943_p7 = pnand %p1941_p6, %p1938_p5 }
  0x37   :  { %1946 = shalt.err (!%p1943_p7)
}
  0x38   :  { %s1947_s22 = scalar_lea.vmem %s52_s27, 2048  ;;  %p1952_p9 = scmp.lt.s32.totalorder %s52_s27, %s52_s27 }
  0x39   :  { %p1948_p8 = scmp.ne.s32.totalorder %s52_s27, %s1947_s22  ;;  %p1953_p10 = scmp.lt.s32.totalorder %s1947_s22, %s1947_s22 }
  0x3b   :  { %p1954_p11 = por %p1953_p10, %p1952_p9 }
  0x3d   :  { %p1955_p12 = pnand %p1954_p11, %p1948_p8 }
  0x3f   :  { %1958 = shalt.err (!%p1955_p12)
}
  0x40   :  { %s2043_s1 = smov 64   ;;  %s2044_s23 = smov 4  }
  0x41   :  { %57 = dma.hbm_to_vmem [thread:$0]  %s2346_s4, 2048, %s52_s27, [#allocation8], %s2043_s1, %s2043_s1, %s2044_s23  }
  0x42   :  { %s2045_s26 = smov [#allocation10]   ;;  %s1959_s8 = scalar_lea.hbm %s2347_s5, 2048 }
  0x43   :  { %s63_s28 = sshll.u32 %s2045_s26, 4  ;;  %p1960_p13 = scmp.ne.s32.totalorder %s2347_s5, %s1959_s8  ;;  %s64_s28 = int_to_ptr.vmem [resolvable:$true] %s63_s28 }
  0x44   :  { %p1963_p0 = scmp.lt.u32.totalorder %s1959_s8, %s2347_s5 }
  0x46   :  { %p1965_p1 = pnand %p1963_p0, %p1960_p13 }
  0x48   :  { %1968 = shalt.err (!%p1965_p1)
}
  0x49   :  { %s1969_s12 = scalar_lea.vmem %s64_s28, 2048  ;;  %p1974_p3 = scmp.lt.s32.totalorder %s64_s28, %s64_s28 }
  0x4a   :  { %p1970_p2 = scmp.ne.s32.totalorder %s64_s28, %s1969_s12  ;;  %p1975_p4 = scmp.lt.s32.totalorder %s1969_s12, %s1969_s12 }
  0x4c   :  { %p1976_p5 = por %p1975_p4, %p1974_p3 }
  0x4e   :  { %p1977_p6 = pnand %p1976_p5, %p1970_p2 }
  0x50   :  { %1980 = shalt.err (!%p1977_p6)
}
  0x51   :  { %69 = dma.hbm_to_vmem [thread:$0]  %s2347_s5, 2048, %s64_s28, [#allocation11], %s2039_s20, %s2039_s20, %s2040_s21  }
  0x52   :  { %2027 = dma.done.wait [#allocation5], 128  }
  0x53   :  { %2028 = vsyncadd [#allocation5], 4294967168 }
  0x54   :  { %2029 = dma.done.wait [#allocation8], 34816  }
  0x55   :  { %2030 = vsyncadd [#allocation8], 4294932480 }
  0x56   :  { %2031 = dma.done.wait [#allocation11], 2048  }
  0x57   :  { %2032 = vsyncadd [#allocation11], 4294965248  ;;  %s89_s13 = sld [smem:[#allocation3]]  ;;  %s1475_s14 = sld [smem:[#allocation3 + $0x1]]  ;;  %v2155_v0 = vld [vmem:[#allocation4] sm:$0xff]  ;;  %vm1073_vm0 = vcmask 1040384  }
  0x58   :  { %v85_v1 = vcombine.high %v2155_v0, %v2155_v0  ;;  %s1510_s20 = sld [smem:[#allocation3 + $0x2]]  ;;  %s1545_s21 = sld [smem:[#allocation3 + $0x3]]  ;;  %vm1076_vm1 = vcmask 1041408   ;;  %vm1079_vm2 = vcmask 1042432  }
  0x59   :  { %s2047_s24 = smov [#allocation12]  }
  0x5a   :  { %v2165_v4 = vpack.c.bf16 %v85_v1, %v85_v1  ;;  %s1408_s25 = sshll.u32 %s2047_s24, 4  ;;  %s1409_s25 = int_to_ptr.vmem [resolvable:$true] %s1408_s25 }
  0x5b   :  { %s1981_s26 = scalar_lea.vmem %s1409_s25, 128  ;;  %p1986_p8 = scmp.lt.s32.totalorder %s1409_s25, %s1409_s25 }
  0x5c   :  { %317 = vmatprep.mubr.bf16.mxu0 %v2165_v4  ;;  %v366_v8 = vshrl.u32 %v2165_v4, 16  ;;  %p1982_p7 = scmp.ne.s32.totalorder %s1409_s25, %s1981_s26  ;;  %p1987_p9 = scmp.lt.s32.totalorder %s1981_s26, %s1981_s26 }
  0x5d   :  { %s1612_s15 = sshll.u32 %s89_s13, 8  ;;  %s1613_s16 = sshll.u32 %s1475_s14, 8 }
  0x5e   :  { %s2159_s17 = scalar_lea.vmem [#allocation7], %s1612_s15  ;;  %s2162_s5 = scalar_lea.vmem [#allocation7], %s1613_s16  ;;  %562 = vmatprep.mubr.bf16.mxu1 %v366_v8 }
  0x5f   :  { %v1650_v2 = vld [vmem:[%s2159_s17 + $0x4] ss:$8 sps:$4 sm:$0xff]   ;;  %v1654_v5 = vld [vmem:[%s2159_s17] ss:$8 sps:$4 sm:$0xff]   ;;  %v1656_v7 = vld [vmem:[%s2159_s17 + $0x14] ss:$8 sps:$4 sm:$0xff]   ;;  %p1988_p10 = por %p1987_p9, %p1986_p8 }
  0x60   :  { %v1652_v3 = vld [vmem:[%s2162_s5 + $0x4] ss:$8 sps:$4 sm:$0xff]   ;;  %285 = vmatprep.subr.bf16.mxu0 %v1650_v2  ;;  %v1655_v6 = vld [vmem:[%s2162_s5] ss:$8 sps:$4 sm:$0xff]   ;;  %v1658_v9 = vld [vmem:[%s2162_s5 + $0x14] ss:$8 sps:$4 sm:$0xff]  }
  0x61   :  { %530 = vmatprep.subr.bf16.mxu1 %v1652_v3  ;;  %286 = vmatpush1.bf16.msra.mxu0 %v1654_v5  ;;  %v1660_v10 = vld [vmem:[%s2159_s17 + $0x10] ss:$8 sps:$4 sm:$0xff]   ;;  %v1662_v12 = vld [vmem:[%s2159_s17 + $0x24] ss:$8 sps:$4 sm:$0xff]   ;;  %v1666_v14 = vld [vmem:[%s2159_s17 + $0x20] ss:$8 sps:$4 sm:$0xff]   ;;  %p1989_p11 = pnand %p1988_p10, %p1982_p7 }
  0x62   :  { %531 = vmatpush1.bf16.msra.mxu1 %v1655_v6  ;;  %287 = vmatprep.subr.bf16.mxu0 %v1656_v7  ;;  %v1661_v11 = vld [vmem:[%s2162_s5 + $0x10] ss:$8 sps:$4 sm:$0xff]   ;;  %v1664_v13 = vld [vmem:[%s2162_s5 + $0x24] ss:$8 sps:$4 sm:$0xff]   ;;  %v1667_v15 = vld [vmem:[%s2162_s5 + $0x20] ss:$8 sps:$4 sm:$0xff]   ;;  %v2239_v6 = vpack.c.bf16 %v2155_v0, %v2155_v0 }
  0x63   :  { %532 = vmatprep.subr.bf16.mxu1 %v1658_v9  ;;  %v1668_v16 = vld [vmem:[%s2159_s17 + $0x34] ss:$8 sps:$4 sm:$0xff]   ;;  %v1672_v18 = vld [vmem:[%s2159_s17 + $0x30] ss:$8 sps:$4 sm:$0xff]   ;;  %v1674_v20 = vld [vmem:[%s2159_s17 + $0x44] ss:$8 sps:$4 sm:$0xff]  }
  0x64   :  { %v1670_v17 = vld [vmem:[%s2162_s5 + $0x34] ss:$8 sps:$4 sm:$0xff]   ;;  %v1673_v19 = vld [vmem:[%s2162_s5 + $0x30] ss:$8 sps:$4 sm:$0xff]   ;;  %v1676_v21 = vld [vmem:[%s2162_s5 + $0x44] ss:$8 sps:$4 sm:$0xff]  }
  0x65   :  { %288 = vmatpush1.bf16.msra.mxu0 %v1660_v10  ;;  %v1678_v22 = vld [vmem:[%s2159_s17 + $0x40] ss:$8 sps:$4 sm:$0xff]   ;;  %v1680_v24 = vld [vmem:[%s2159_s17 + $0x54] ss:$8 sps:$4 sm:$0xff]   ;;  %v1684_v26 = vld [vmem:[%s2159_s17 + $0x50] ss:$8 sps:$4 sm:$0xff]  }
  0x66   :  { %533 = vmatpush1.bf16.msra.mxu1 %v1661_v11  ;;  %289 = vmatprep.subr.bf16.mxu0 %v1662_v12  ;;  %v1679_v23 = vld [vmem:[%s2162_s5 + $0x40] ss:$8 sps:$4 sm:$0xff]   ;;  %v1682_v25 = vld [vmem:[%s2162_s5 + $0x54] ss:$8 sps:$4 sm:$0xff]   ;;  %v1685_v27 = vld [vmem:[%s2162_s5 + $0x50] ss:$8 sps:$4 sm:$0xff]  }
  0x67   :  { %534 = vmatprep.subr.bf16.mxu1 %v1664_v13  ;;  %v1686_v28 = vld [vmem:[%s2159_s17 + $0x64] ss:$8 sps:$4 sm:$0xff]   ;;  %v1690_v30 = vld [vmem:[%s2159_s17 + $0x60] ss:$8 sps:$4 sm:$0xff]   ;;  %v1692_v32 = vld [vmem:[%s2159_s17 + $0x74] ss:$8 sps:$4 sm:$0xff]  }
  0x68   :  { %v1688_v29 = vld [vmem:[%s2162_s5 + $0x64] ss:$8 sps:$4 sm:$0xff]   ;;  %v1691_v31 = vld [vmem:[%s2162_s5 + $0x60] ss:$8 sps:$4 sm:$0xff]   ;;  %v1694_v33 = vld [vmem:[%s2162_s5 + $0x74] ss:$8 sps:$4 sm:$0xff]  }
  0x69   :  { %290 = vmatpush1.bf16.msra.mxu0 %v1666_v14  ;;  %v1696_v34 = vld [vmem:[%s2159_s17 + $0x70] ss:$8 sps:$4 sm:$0xff]   ;;  %v1698_v36 = vld [vmem:[%s2159_s17 + $0x84] ss:$8 sps:$4 sm:$0xff]   ;;  %v1702_v38 = vld [vmem:[%s2159_s17 + $0x80] ss:$8 sps:$4 sm:$0xff]  }
  0x6a   :  { %535 = vmatpush1.bf16.msra.mxu1 %v1667_v15  ;;  %291 = vmatprep.subr.bf16.mxu0 %v1668_v16  ;;  %v1697_v35 = vld [vmem:[%s2162_s5 + $0x70] ss:$8 sps:$4 sm:$0xff]   ;;  %v1700_v37 = vld [vmem:[%s2162_s5 + $0x84] ss:$8 sps:$4 sm:$0xff]   ;;  %v1703_v39 = vld [vmem:[%s2162_s5 + $0x80] ss:$8 sps:$4 sm:$0xff]  }
  0x6b   :  { %536 = vmatprep.subr.bf16.mxu1 %v1670_v17  ;;  %v1704_v40 = vld [vmem:[%s2159_s17 + $0x94] ss:$8 sps:$4 sm:$0xff]   ;;  %v1708_v42 = vld [vmem:[%s2159_s17 + $0x90] ss:$8 sps:$4 sm:$0xff]   ;;  %v1710_v44 = vld [vmem:[%s2159_s17 + $0xa4] ss:$8 sps:$4 sm:$0xff]  }
  0x6c   :  { %v1706_v41 = vld [vmem:[%s2162_s5 + $0x94] ss:$8 sps:$4 sm:$0xff]   ;;  %v1709_v43 = vld [vmem:[%s2162_s5 + $0x90] ss:$8 sps:$4 sm:$0xff]   ;;  %v1712_v45 = vld [vmem:[%s2162_s5 + $0xa4] ss:$8 sps:$4 sm:$0xff]  }
  0x6d   :  { %292 = vmatpush1.bf16.msra.mxu0 %v1672_v18  ;;  %s1614_s0 = sshll.u32 %s1510_s20, 8  ;;  %v1714_v46 = vld [vmem:[%s2159_s17 + $0xa0] ss:$8 sps:$4 sm:$0xff]   ;;  %v1716_v48 = vld [vmem:[%s2159_s17 + $0xb4] ss:$8 sps:$4 sm:$0xff]   ;;  %s1615_s18 = sshll.u32 %s1545_s21, 8 }
  0x6e   :  { %537 = vmatpush1.bf16.msra.mxu1 %v1673_v19  ;;  %293 = vmatprep.subr.bf16.mxu0 %v1674_v20  ;;  %v1715_v47 = vld [vmem:[%s2162_s5 + $0xa0] ss:$8 sps:$4 sm:$0xff]   ;;  %v1718_v49 = vld [vmem:[%s2162_s5 + $0xb4] ss:$8 sps:$4 sm:$0xff]   ;;  %s2215_s19 = scalar_lea.vmem [#allocation7], %s1614_s0  ;;  %s2220_s22 = scalar_lea.vmem [#allocation7], %s1615_s18 }
  0x6f   :  { %538 = vmatprep.subr.bf16.mxu1 %v1676_v21  ;;  %v1720_v50 = vld [vmem:[%s2159_s17 + $0xb0] ss:$8 sps:$4 sm:$0xff]   ;;  %v1722_v52 = vld [vmem:[%s2159_s17 + $0xc4] ss:$8 sps:$4 sm:$0xff]   ;;  %v1726_v54 = vld [vmem:[%s2159_s17 + $0xc0] ss:$8 sps:$4 sm:$0xff]  }
  0x70   :  { %v1721_v51 = vld [vmem:[%s2162_s5 + $0xb0] ss:$8 sps:$4 sm:$0xff]   ;;  %v1724_v53 = vld [vmem:[%s2162_s5 + $0xc4] ss:$8 sps:$4 sm:$0xff]   ;;  %v1727_v55 = vld [vmem:[%s2162_s5 + $0xc0] ss:$8 sps:$4 sm:$0xff]  }
  0x71   :  { %294 = vmatpush1.bf16.msra.mxu0 %v1678_v22  ;;  %v1728_v56 = vld [vmem:[%s2159_s17 + $0xd4] ss:$8 sps:$4 sm:$0xff]   ;;  %v1732_v58 = vld [vmem:[%s2159_s17 + $0xd0] ss:$8 sps:$4 sm:$0xff]   ;;  %v1734_v60 = vld [vmem:[%s2159_s17 + $0xe4] ss:$8 sps:$4 sm:$0xff]  }
  0x72   :  { %539 = vmatpush1.bf16.msra.mxu1 %v1679_v23  ;;  %295 = vmatprep.subr.bf16.mxu0 %v1680_v24  ;;  %v1730_v57 = vld [vmem:[%s2162_s5 + $0xd4] ss:$8 sps:$4 sm:$0xff]   ;;  %v1733_v59 = vld [vmem:[%s2162_s5 + $0xd0] ss:$8 sps:$4 sm:$0xff]   ;;  %v1736_v61 = vld [vmem:[%s2162_s5 + $0xe4] ss:$8 sps:$4 sm:$0xff]  }
  0x73   :  { %540 = vmatprep.subr.bf16.mxu1 %v1682_v25  ;;  %v1738_v62 = vld [vmem:[%s2159_s17 + $0xe0] ss:$8 sps:$4 sm:$0xff]   ;;  %v1740_v1 = vld [vmem:[%s2159_s17 + $0xf4] ss:$8 sps:$4 sm:$0xff]   ;;  %v1744_v3 = vld [vmem:[%s2159_s17 + $0xf0] ss:$8 sps:$4 sm:$0xff]  }
  0x74   :  { %v1739_v63 = vld [vmem:[%s2162_s5 + $0xe0] ss:$8 sps:$4 sm:$0xff]   ;;  %v1742_v2 = vld [vmem:[%s2162_s5 + $0xf4] ss:$8 sps:$4 sm:$0xff]   ;;  %v1745_v5 = vld [vmem:[%s2162_s5 + $0xf0] ss:$8 sps:$4 sm:$0xff]  }
  0x75   :  { %296 = vmatpush1.bf16.msra.mxu0 %v1684_v26  ;;  %v1749_v7 = vld [vmem:[%s2215_s19 + $0x4] ss:$8 sps:$4 sm:$0xff]   ;;  %v363_v10 = vshrl.u32 %v2239_v6, 16  ;;  %v1747_v11 = vld [vmem:[%s2215_s19] ss:$8 sps:$4 sm:$0xff]   ;;  %v851_v14 = vrot.slane %v366_v8, 1 }
  0x76   :  { %541 = vmatpush1.bf16.msra.mxu1 %v1685_v27  ;;  %297 = vmatprep.subr.bf16.mxu0 %v1686_v28  ;;  %v1752_v9 = vld [vmem:[%s2220_s22 + $0x4] ss:$8 sps:$4 sm:$0xff]   ;;  %v1750_v12 = vld [vmem:[%s2220_s22] ss:$8 sps:$4 sm:$0xff]   ;;  %v1755_v13 = vld [vmem:[%s2215_s19 + $0x14] ss:$8 sps:$4 sm:$0xff]  }
  0x77   :  { %542 = vmatprep.subr.bf16.mxu1 %v1688_v29  ;;  %v1758_v0 = vld [vmem:[%s2220_s22 + $0x14] ss:$8 sps:$4 sm:$0xff]   ;;  %v610_v15 = vrot.slane %v2165_v4, 1  ;;  %v1753_v16 = vld [vmem:[%s2215_s19 + $0x10] ss:$8 sps:$4 sm:$0xff]  }
  0x78   :  { %v1756_v17 = vld [vmem:[%s2220_s22 + $0x10] ss:$8 sps:$4 sm:$0xff]   ;;  %v1761_v18 = vld [vmem:[%s2215_s19 + $0x24] ss:$8 sps:$4 sm:$0xff]   ;;  %v1759_v4 = vld [vmem:[%s2215_s19 + $0x20] ss:$8 sps:$4 sm:$0xff]  }
  0x79   :  { %298 = vmatpush1.bf16.msra.mxu0 %v1690_v30  ;;  %v1764_v8 = vld [vmem:[%s2220_s22 + $0x24] ss:$8 sps:$4 sm:$0xff]   ;;  %v1762_v19 = vld [vmem:[%s2220_s22 + $0x20] ss:$8 sps:$4 sm:$0xff]   ;;  %v1767_v20 = vld [vmem:[%s2215_s19 + $0x34] ss:$8 sps:$4 sm:$0xff]  }
  0x7a   :  { %543 = vmatpush1.bf16.msra.mxu1 %v1691_v31  ;;  %299 = vmatprep.subr.bf16.mxu0 %v1692_v32  ;;  %v1770_v21 = vld [vmem:[%s2220_s22 + $0x34] ss:$8 sps:$4 sm:$0xff]   ;;  %v1765_v22 = vld [vmem:[%s2215_s19 + $0x30] ss:$8 sps:$4 sm:$0xff]   ;;  %v1773_v24 = vld [vmem:[%s2215_s19 + $0x44] ss:$8 sps:$4 sm:$0xff]  }
  0x7b   :  { %544 = vmatprep.subr.bf16.mxu1 %v1694_v33  ;;  %v1768_v23 = vld [vmem:[%s2220_s22 + $0x30] ss:$8 sps:$4 sm:$0xff]   ;;  %v1776_v25 = vld [vmem:[%s2220_s22 + $0x44] ss:$8 sps:$4 sm:$0xff]   ;;  %v1771_v26 = vld [vmem:[%s2215_s19 + $0x40] ss:$8 sps:$4 sm:$0xff]  }
  0x7c   :  { %v1774_v27 = vld [vmem:[%s2220_s22 + $0x40] ss:$8 sps:$4 sm:$0xff]   ;;  %v1779_v28 = vld [vmem:[%s2215_s19 + $0x54] ss:$8 sps:$4 sm:$0xff]   ;;  %v1777_v30 = vld [vmem:[%s2215_s19 + $0x50] ss:$8 sps:$4 sm:$0xff]  }
  0x7d   :  { %300 = vmatpush1.bf16.msra.mxu0 %v1696_v34  ;;  %v1782_v29 = vld [vmem:[%s2220_s22 + $0x54] ss:$8 sps:$4 sm:$0xff]   ;;  %v1780_v31 = vld [vmem:[%s2220_s22 + $0x50] ss:$8 sps:$4 sm:$0xff]   ;;  %v1785_v32 = vld [vmem:[%s2215_s19 + $0x64] ss:$8 sps:$4 sm:$0xff]  }
  0x7e   :  { %545 = vmatpush1.bf16.msra.mxu1 %v1697_v35  ;;  %301 = vmatprep.subr.bf16.mxu0 %v1698_v36  ;;  %v1788_v33 = vld [vmem:[%s2220_s22 + $0x64] ss:$8 sps:$4 sm:$0xff]   ;;  %v1783_v34 = vld [vmem:[%s2215_s19 + $0x60] ss:$8 sps:$4 sm:$0xff]   ;;  %v1791_v36 = vld [vmem:[%s2215_s19 + $0x74] ss:$8 sps:$4 sm:$0xff]  }
  0x7f   :  { %546 = vmatprep.subr.bf16.mxu1 %v1700_v37  ;;  %v1786_v35 = vld [vmem:[%s2220_s22 + $0x60] ss:$8 sps:$4 sm:$0xff]   ;;  %v1794_v37 = vld [vmem:[%s2220_s22 + $0x74] ss:$8 sps:$4 sm:$0xff]  }
  0x81   :  { %302 = vmatpush1.bf16.msra.mxu0 %v1702_v38  ;;  %v1789_v38 = vld [vmem:[%s2215_s19 + $0x70] ss:$8 sps:$4 sm:$0xff]  }
  0x82   :  { %547 = vmatpush1.bf16.msra.mxu1 %v1703_v39  ;;  %303 = vmatprep.subr.bf16.mxu0 %v1704_v40  ;;  %v1792_v39 = vld [vmem:[%s2220_s22 + $0x70] ss:$8 sps:$4 sm:$0xff]   ;;  %v1797_v40 = vld [vmem:[%s2215_s19 + $0x84] ss:$8 sps:$4 sm:$0xff]  }
  0x83   :  { %548 = vmatprep.subr.bf16.mxu1 %v1706_v41  ;;  %v1800_v41 = vld [vmem:[%s2220_s22 + $0x84] ss:$8 sps:$4 sm:$0xff]  }
  0x85   :  { %304 = vmatpush1.bf16.msra.mxu0 %v1708_v42  ;;  %v1795_v42 = vld [vmem:[%s2215_s19 + $0x80] ss:$8 sps:$4 sm:$0xff]  }
  0x86   :  { %549 = vmatpush1.bf16.msra.mxu1 %v1709_v43  ;;  %305 = vmatprep.subr.bf16.mxu0 %v1710_v44  ;;  %v1798_v43 = vld [vmem:[%s2220_s22 + $0x80] ss:$8 sps:$4 sm:$0xff]   ;;  %v1803_v44 = vld [vmem:[%s2215_s19 + $0x94] ss:$8 sps:$4 sm:$0xff]  }
  0x87   :  { %550 = vmatprep.subr.bf16.mxu1 %v1712_v45  ;;  %v1806_v45 = vld [vmem:[%s2220_s22 + $0x94] ss:$8 sps:$4 sm:$0xff]  }
  0x89   :  { %306 = vmatpush1.bf16.msra.mxu0 %v1714_v46  ;;  %v1801_v46 = vld [vmem:[%s2215_s19 + $0x90] ss:$8 sps:$4 sm:$0xff]  }
  0x8a   :  { %551 = vmatpush1.bf16.msra.mxu1 %v1715_v47  ;;  %307 = vmatprep.subr.bf16.mxu0 %v1716_v48  ;;  %v1804_v47 = vld [vmem:[%s2220_s22 + $0x90] ss:$8 sps:$4 sm:$0xff]   ;;  %v1809_v48 = vld [vmem:[%s2215_s19 + $0xa4] ss:$8 sps:$4 sm:$0xff]  }
  0x8b   :  { %552 = vmatprep.subr.bf16.mxu1 %v1718_v49  ;;  %v1812_v49 = vld [vmem:[%s2220_s22 + $0xa4] ss:$8 sps:$4 sm:$0xff]  }
  0x8d   :  { %308 = vmatpush1.bf16.msra.mxu0 %v1720_v50  ;;  %v1807_v50 = vld [vmem:[%s2215_s19 + $0xa0] ss:$8 sps:$4 sm:$0xff]  }
  0x8e   :  { %553 = vmatpush1.bf16.msra.mxu1 %v1721_v51  ;;  %309 = vmatprep.subr.bf16.mxu0 %v1722_v52  ;;  %v1810_v51 = vld [vmem:[%s2220_s22 + $0xa0] ss:$8 sps:$4 sm:$0xff]   ;;  %v1815_v52 = vld [vmem:[%s2215_s19 + $0xb4] ss:$8 sps:$4 sm:$0xff]  }
  0x8f   :  { %554 = vmatprep.subr.bf16.mxu1 %v1724_v53  ;;  %v1818_v53 = vld [vmem:[%s2220_s22 + $0xb4] ss:$8 sps:$4 sm:$0xff]  }
  0x91   :  { %310 = vmatpush1.bf16.msra.mxu0 %v1726_v54  ;;  %v1813_v54 = vld [vmem:[%s2215_s19 + $0xb0] ss:$8 sps:$4 sm:$0xff]  }
  0x92   :  { %555 = vmatpush1.bf16.msra.mxu1 %v1727_v55  ;;  %311 = vmatprep.subr.bf16.mxu0 %v1728_v56  ;;  %v1816_v55 = vld [vmem:[%s2220_s22 + $0xb0] ss:$8 sps:$4 sm:$0xff]   ;;  %v1821_v56 = vld [vmem:[%s2215_s19 + $0xc4] ss:$8 sps:$4 sm:$0xff]  }
  0x93   :  { %556 = vmatprep.subr.bf16.mxu1 %v1730_v57  ;;  %v1824_v57 = vld [vmem:[%s2220_s22 + $0xc4] ss:$8 sps:$4 sm:$0xff]  }
  0x95   :  { %312 = vmatpush1.bf16.msra.mxu0 %v1732_v58  ;;  %v1819_v58 = vld [vmem:[%s2215_s19 + $0xc0] ss:$8 sps:$4 sm:$0xff]  }
  0x96   :  { %557 = vmatpush1.bf16.msra.mxu1 %v1733_v59  ;;  %313 = vmatprep.subr.bf16.mxu0 %v1734_v60  ;;  %v1822_v59 = vld [vmem:[%s2220_s22 + $0xc0] ss:$8 sps:$4 sm:$0xff]   ;;  %v1827_v60 = vld [vmem:[%s2215_s19 + $0xd4] ss:$8 sps:$4 sm:$0xff]  }
  0x97   :  { %558 = vmatprep.subr.bf16.mxu1 %v1736_v61  ;;  %v1830_v61 = vld [vmem:[%s2220_s22 + $0xd4] ss:$8 sps:$4 sm:$0xff]  }
  0x99   :  { %314 = vmatpush1.bf16.msra.mxu0 %v1738_v62  ;;  %v1825_v62 = vld [vmem:[%s2215_s19 + $0xd0] ss:$8 sps:$4 sm:$0xff]  }
  0x9a   :  { %559 = vmatpush1.bf16.msra.mxu1 %v1739_v63  ;;  %315 = vmatprep.subr.bf16.mxu0 %v1740_v1  ;;  %v1828_v63 = vld [vmem:[%s2220_s22 + $0xd0] ss:$8 sps:$4 sm:$0xff]   ;;  %v1833_v1 = vld [vmem:[%s2215_s19 + $0xe4] ss:$8 sps:$4 sm:$0xff]  }
  0x9b   :  { %560 = vmatprep.subr.bf16.mxu1 %v1742_v2  ;;  %v1836_v2 = vld [vmem:[%s2220_s22 + $0xe4] ss:$8 sps:$4 sm:$0xff]  }
  0x9d   :  { %316 = vmatpush1.bf16.msra.mxu0 %v1744_v3  ;;  %v1831_v3 = vld [vmem:[%s2215_s19 + $0xe0] ss:$8 sps:$4 sm:$0xff]  }
  0x9e   :  { %561 = vmatpush1.bf16.msra.mxu1 %v1745_v5  ;;  %773 = vmatprep.subr.bf16.mxu0 %v1749_v7  ;;  %v1834_v5 = vld [vmem:[%s2220_s22 + $0xe0] ss:$8 sps:$4 sm:$0xff]   ;;  %v1839_v7 = vld [vmem:[%s2215_s19 + $0xf4] ss:$8 sps:$4 sm:$0xff]  }
  0x9f   :  { %1014 = vmatprep.subr.bf16.mxu1 %v1752_v9  ;;  %v1842_v9 = vld [vmem:[%s2220_s22 + $0xf4] ss:$8 sps:$4 sm:$0xff]  }
  0xa0   :  { %318 = vmatmul.mubr.bf16.vlgmr.msra.gmra.mrb[0].mxu0 %v2239_v6 }
  0xa1   :  { %563 = vmatmul.mubr.bf16.vlgmr.msra.gmra.mrb[0].mxu1 %v363_v10  ;;  %774 = vmatpush1.bf16.msra.mxu0 %v1747_v11  ;;  %v1837_v11 = vld [vmem:[%s2215_s19 + $0xf0] ss:$8 sps:$4 sm:$0xff]  }
  0xa2   :  { %1015 = vmatpush1.bf16.msra.mxu1 %v1750_v12  ;;  %775 = vmatprep.subr.bf16.mxu0 %v1755_v13  ;;  %v1840_v12 = vld [vmem:[%s2220_s22 + $0xf0] ss:$8 sps:$4 sm:$0xff]   ;;  %v850_v13 = vrot.slane %v363_v10, 1  ;;  %v1850_v10 = vld [vmem:[#allocation9 + $0x18] sm:$0xff]  }
  0xa3   :  { %1016 = vmatprep.subr.bf16.mxu1 %v1758_v0  ;;  %805 = vmatprep.mubr.bf16.mxu0 %v610_v15  ;;  %v609_v0 = vrot.slane %v2239_v6, 1  ;;  %v1844_v15 = vld [vmem:[#allocation9] sm:$0xff]  }
  0xa4   :  { %1046 = vmatprep.mubr.bf16.mxu1 %v851_v14  ;;  %v1843_v14 = vld [vmem:[#allocation9 + $0x40] sm:$0xff]  }
  0xa5   :  { %776 = vmatpush1.bf16.msra.mxu0 %v1753_v16  ;;  %v1845_v16 = vld [vmem:[#allocation9 + $0x48] sm:$0xff]   ;;  %v1851_v6 = vld [vmem:[#allocation9 + $0x60] sm:$0xff]  }
  0xa6   :  { %1017 = vmatpush1.bf16.msra.mxu1 %v1756_v17  ;;  %777 = vmatprep.subr.bf16.mxu0 %v1761_v18  ;;  %v1846_v17 = vld [vmem:[#allocation9 + $0x8] sm:$0xff]   ;;  %v1847_v18 = vld [vmem:[#allocation9 + $0x50] sm:$0xff]  }
  0xa7   :  { %1018 = vmatprep.subr.bf16.mxu1 %v1764_v8  ;;  %v1848_v8 = vld [vmem:[#allocation9 + $0x10] sm:$0xff]  }
  0xa9   :  { %778 = vmatpush1.bf16.msra.mxu0 %v1759_v4  ;;  %v1849_v4 = vld [vmem:[#allocation9 + $0x58] sm:$0xff]  }
  0xaa   :  { %1019 = vmatpush1.bf16.msra.mxu1 %v1762_v19  ;;  %779 = vmatprep.subr.bf16.mxu0 %v1767_v20  ;;  %v1852_v19 = vld [vmem:[#allocation9 + $0x20] sm:$0xff]   ;;  %v1853_v20 = vld [vmem:[#allocation9 + $0x68] sm:$0xff]  }
  0xab   :  { %1020 = vmatprep.subr.bf16.mxu1 %v1770_v21  ;;  %v1854_v21 = vld [vmem:[#allocation9 + $0x28] sm:$0xff]  }
  0xad   :  { %780 = vmatpush1.bf16.msra.mxu0 %v1765_v22  ;;  %v1855_v22 = vld [vmem:[#allocation9 + $0x70] sm:$0xff]  }
  0xae   :  { %1021 = vmatpush1.bf16.msra.mxu1 %v1768_v23  ;;  %781 = vmatprep.subr.bf16.mxu0 %v1773_v24  ;;  %v1856_v23 = vld [vmem:[#allocation9 + $0x30] sm:$0xff]   ;;  %v1857_v24 = vld [vmem:[#allocation9 + $0x78] sm:$0xff]  }
  0xaf   :  { %1022 = vmatprep.subr.bf16.mxu1 %v1776_v25  ;;  %v1858_v25 = vld [vmem:[#allocation9 + $0x38] sm:$0xff]  }
  0xb1   :  { %782 = vmatpush1.bf16.msra.mxu0 %v1771_v26  ;;  %v1859_v26 = vld [vmem:[#allocation10] ss:$8 sps:$4 sm:$0xff]  }
  0xb2   :  { %1023 = vmatpush1.bf16.msra.mxu1 %v1774_v27  ;;  %783 = vmatprep.subr.bf16.mxu0 %v1779_v28  ;;  %v1861_v27 = vld [vmem:[#allocation10 + $0x4] ss:$8 sps:$4 sm:$0xff]   ;;  %v1864_v28 = vld [vmem:[#allocation10 + $0x14] ss:$8 sps:$4 sm:$0xff]  }
  0xb3   :  { %1024 = vmatprep.subr.bf16.mxu1 %v1782_v29  ;;  %v1862_v29 = vld [vmem:[#allocation10 + $0x10] ss:$8 sps:$4 sm:$0xff]  }
  0xb5   :  { %784 = vmatpush1.bf16.msra.mxu0 %v1777_v30  ;;  %v1867_v30 = vld [vmem:[#allocation10 + $0x24] ss:$8 sps:$4 sm:$0xff]  }
  0xb6   :  { %1025 = vmatpush1.bf16.msra.mxu1 %v1780_v31  ;;  %785 = vmatprep.subr.bf16.mxu0 %v1785_v32  ;;  %v1865_v31 = vld [vmem:[#allocation10 + $0x20] ss:$8 sps:$4 sm:$0xff]   ;;  %v1870_v32 = vld [vmem:[#allocation10 + $0x34] ss:$8 sps:$4 sm:$0xff]  }
  0xb7   :  { %1026 = vmatprep.subr.bf16.mxu1 %v1788_v33  ;;  %v1868_v33 = vld [vmem:[#allocation10 + $0x30] ss:$8 sps:$4 sm:$0xff]  }
  0xb9   :  { %786 = vmatpush1.bf16.msra.mxu0 %v1783_v34  ;;  %v1873_v34 = vld [vmem:[#allocation10 + $0x44] ss:$8 sps:$4 sm:$0xff]  }
  0xba   :  { %1027 = vmatpush1.bf16.msra.mxu1 %v1786_v35  ;;  %787 = vmatprep.subr.bf16.mxu0 %v1791_v36  ;;  %v1871_v35 = vld [vmem:[#allocation10 + $0x40] ss:$8 sps:$4 sm:$0xff]   ;;  %v1876_v36 = vld [vmem:[#allocation10 + $0x54] ss:$8 sps:$4 sm:$0xff]  }
  0xbb   :  { %1028 = vmatprep.subr.bf16.mxu1 %v1794_v37  ;;  %v1874_v37 = vld [vmem:[#allocation10 + $0x50] ss:$8 sps:$4 sm:$0xff]  }
  0xbd   :  { %788 = vmatpush1.bf16.msra.mxu0 %v1789_v38 }
  0xbe   :  { %1029 = vmatpush1.bf16.msra.mxu1 %v1792_v39  ;;  %789 = vmatprep.subr.bf16.mxu0 %v1797_v40 }
  0xbf   :  { %1030 = vmatprep.subr.bf16.mxu1 %v1800_v41 }
  0xc1   :  { %790 = vmatpush1.bf16.msra.mxu0 %v1795_v42 }
  0xc2   :  { %1031 = vmatpush1.bf16.msra.mxu1 %v1798_v43  ;;  %791 = vmatprep.subr.bf16.mxu0 %v1803_v44 }
  0xc3   :  { %1032 = vmatprep.subr.bf16.mxu1 %v1806_v45 }
  0xc5   :  { %792 = vmatpush1.bf16.msra.mxu0 %v1801_v46 }
  0xc6   :  { %1033 = vmatpush1.bf16.msra.mxu1 %v1804_v47  ;;  %793 = vmatprep.subr.bf16.mxu0 %v1809_v48 }
  0xc7   :  { %1034 = vmatprep.subr.bf16.mxu1 %v1812_v49 }
  0xc9   :  { %794 = vmatpush1.bf16.msra.mxu0 %v1807_v50 }
  0xca   :  { %1035 = vmatpush1.bf16.msra.mxu1 %v1810_v51  ;;  %795 = vmatprep.subr.bf16.mxu0 %v1815_v52 }
  0xcb   :  { %1036 = vmatprep.subr.bf16.mxu1 %v1818_v53 }
  0xcd   :  { %796 = vmatpush1.bf16.msra.mxu0 %v1813_v54 }
  0xce   :  { %1037 = vmatpush1.bf16.msra.mxu1 %v1816_v55  ;;  %797 = vmatprep.subr.bf16.mxu0 %v1821_v56 }
  0xcf   :  { %1038 = vmatprep.subr.bf16.mxu1 %v1824_v57 }
  0xd1   :  { %798 = vmatpush1.bf16.msra.mxu0 %v1819_v58 }
  0xd2   :  { %1039 = vmatpush1.bf16.msra.mxu1 %v1822_v59  ;;  %799 = vmatprep.subr.bf16.mxu0 %v1827_v60 }
  0xd3   :  { %1040 = vmatprep.subr.bf16.mxu1 %v1830_v61 }
  0xd5   :  { %800 = vmatpush1.bf16.msra.mxu0 %v1825_v62 }
  0xd6   :  { %1041 = vmatpush1.bf16.msra.mxu1 %v1828_v63  ;;  %801 = vmatprep.subr.bf16.mxu0 %v1833_v1 }
  0xd7   :  { %1042 = vmatprep.subr.bf16.mxu1 %v1836_v2 }
  0xd9   :  { %802 = vmatpush1.bf16.msra.mxu0 %v1831_v3 }
  0xda   :  { %1043 = vmatpush1.bf16.msra.mxu1 %v1834_v5  ;;  %803 = vmatprep.subr.bf16.mxu0 %v1839_v7 }
  0xdb   :  { %1044 = vmatprep.subr.bf16.mxu1 %v1842_v9  ;;  %v1879_v9 = vld [vmem:[#allocation10 + $0x64] ss:$8 sps:$4 sm:$0xff]  }
  0xdd   :  { %804 = vmatpush1.bf16.msra.mxu0 %v1837_v11  ;;  %v1877_v11 = vld [vmem:[#allocation10 + $0x60] ss:$8 sps:$4 sm:$0xff]  }
  0xde   :  { %1045 = vmatpush1.bf16.msra.mxu1 %v1840_v12  ;;  %1616 = vmatprep.subr.bf16.mxu0 %v1843_v14  ;;  %v1882_v12 = vld [vmem:[#allocation10 + $0x74] ss:$8 sps:$4 sm:$0xff]  }
  0xdf   :  { %1356 = vmatprep.subr.bf16.mxu1 %v1861_v27 }
  0xe0   :  { %806 = vmatmul.mubr.bf16.vlgmr.msra.gmra.mrb[4].mxu0 %v609_v0  ;;  %v2046_v0 = vmov 0  }
  0xe1   :  { %1047 = vmatmul.mubr.bf16.vlgmr.msra.gmra.mrb[4].mxu1 %v850_v13  ;;  %1617 = vmatpush3.bf16.msra.mxu0 %v1844_v15  ;;  %v1880_v13 = vld [vmem:[#allocation10 + $0x70] ss:$8 sps:$4 sm:$0xff]  }
  0xe2   :  { %1618 = vmatprep.subr.bf16.mxu0 %v1845_v16  ;;  %1357 = vmatpush1.bf16.msra.mxu1 %v1859_v26  ;;  %v1121_v15 = vld [vmem:[%s2345_s3] sm:$0xf] }
  0xe3   :  { %1358 = vmatprep.subr.bf16.mxu1 %v1864_v28  ;;  %1388 = vmatprep.mubr.bf16.mxu1 %v2046_v0 }
  0xe5   :  { %1619 = vmatpush3.bf16.msra.mxu0 %v1846_v17 }
  0xe6   :  { %1620 = vmatprep.subr.bf16.mxu0 %v1847_v18  ;;  %1359 = vmatpush1.bf16.msra.mxu1 %v1862_v29 }
  0xe7   :  { %1360 = vmatprep.subr.bf16.mxu1 %v1867_v30 }
  0xe9   :  { %1621 = vmatpush3.bf16.msra.mxu0 %v1848_v8 }
  0xea   :  { %1622 = vmatprep.subr.bf16.mxu0 %v1849_v4  ;;  %1361 = vmatpush1.bf16.msra.mxu1 %v1865_v31 }
  0xeb   :  { %1362 = vmatprep.subr.bf16.mxu1 %v1870_v32 }
  0xed   :  { %1623 = vmatpush3.bf16.msra.mxu0 %v1850_v10 }
  0xee   :  { %1624 = vmatprep.subr.bf16.mxu0 %v1851_v6  ;;  %1363 = vmatpush1.bf16.msra.mxu1 %v1868_v33 }
  0xef   :  { %1364 = vmatprep.subr.bf16.mxu1 %v1873_v34 }
  0xf1   :  { %1625 = vmatpush3.bf16.msra.mxu0 %v1852_v19 }
  0xf2   :  { %1626 = vmatprep.subr.bf16.mxu0 %v1853_v20  ;;  %1365 = vmatpush1.bf16.msra.mxu1 %v1871_v35 }
  0xf3   :  { %1366 = vmatprep.subr.bf16.mxu1 %v1876_v36 }
  0xf5   :  { %1627 = vmatpush3.bf16.msra.mxu0 %v1854_v21 }
  0xf6   :  { %1628 = vmatprep.subr.bf16.mxu0 %v1855_v22  ;;  %1367 = vmatpush1.bf16.msra.mxu1 %v1874_v37 }
  0xf7   :  { %1368 = vmatprep.subr.bf16.mxu1 %v1879_v9 }
  0xf9   :  { %1629 = vmatpush3.bf16.msra.mxu0 %v1856_v23 }
  0xfa   :  { %1630 = vmatprep.subr.bf16.mxu0 %v1857_v24  ;;  %1369 = vmatpush1.bf16.msra.mxu1 %v1877_v11 }
  0xfb   :  { %1370 = vmatprep.subr.bf16.mxu1 %v1882_v12 }
  0xfd   :  { %1631 = vmatpush3.bf16.msra.mxu0 %v1858_v25 }
  0xfe   :  { %1371 = vmatpush1.bf16.msra.mxu1 %v1880_v13 }
 0x173   :  { %v319_v38 = vpop.f32.mrb[0].mxu0 }
 0x174   :  { %v564_v39 = vpop.f32.mrb[0].mxu1  ;;  %v321_v41 = vpop.f32.mrb[1].mxu0 }
 0x175   :  { %v1057_v40 = vrot.slane %v564_v39, 7  ;;  %v566_v42 = vpop.f32.mrb[1].mxu1  ;;  %v323_v44 = vpop.f32.mrb[2].mxu0 }
 0x176   :  { %v1058_v43 = vrot.slane %v566_v42, 7  ;;  %v568_v45 = vpop.f32.mrb[2].mxu1  ;;  %v324_v47 = vpop.f32.mrb[3].mxu0 }
 0x177   :  { %v1074_v46 = vsel %vm1073_vm0, %v319_v38, %v1057_v40  ;;  %v569_v48 = vpop.f32.mrb[3].mxu1 }
 0x178   :  { %v1075_v49 = vsel %vm1073_vm0, %v321_v41, %v1058_v43 }
 0x1b3   :  { %v807_v50 = vpop.f32.mrb[4].mxu0 }
 0x1b4   :  { %v1048_v51 = vpop.f32.mrb[4].mxu1  ;;  %v1063_v52 = vrot.slane %v807_v50, 6  ;;  %v809_v54 = vpop.f32.mrb[5].mxu0 }
 0x1b5   :  { %v1069_v53 = vrot.slane %v1048_v51, 5  ;;  %v1050_v55 = vpop.f32.mrb[5].mxu1  ;;  %v1064_v56 = vrot.slane %v809_v54, 6  ;;  %v811_v58 = vpop.f32.mrb[6].mxu0 }
 0x1b6   :  { %v1070_v57 = vrot.slane %v1050_v55, 5  ;;  %v1052_v59 = vpop.f32.mrb[6].mxu1  ;;  %v1077_v60 = vsel %vm1076_vm1, %v1074_v46, %v1063_v52  ;;  %v812_v61 = vpop.f32.mrb[7].mxu0 }
 0x1b7   :  { %v1053_v62 = vpop.f32.mrb[7].mxu1  ;;  %v1080_v63 = vsel %vm1079_vm2, %v1077_v60, %v1069_v53  ;;  %v1078_v1 = vsel %vm1076_vm1, %v1075_v49, %v1064_v56 }
 0x1b8   :  { %v1081_v2 = vsel %vm1079_vm2, %v1078_v1, %v1070_v57  ;;  %v1087_v7 = vpack.c.bf16 %v1080_v63, %v1080_v63 }
 0x1b9   :  { %v1088_v3 = vpack.c.bf16 %v1081_v2, %v1081_v2  ;;  %v1084_v5 = vcombine.low %v1080_v63, %v1081_v2 }
 0x1bb   :  { %1250 = vmatprep.mubr.bf16.mxu0 %v1088_v3  ;;  %1086 = vst [vmem:[#allocation12] sm:$0xff] %v1084_v5 }
 0x1bc   :  { %1251 = vmatmul.mubr.bf16.vlgmr.msra.gmra.mrb[8].mxu0 %v1087_v7 }
 0x28f   :  { %v1632_v14 = vpop.f32.mrb[8].mxu0 }
 0x290   :  { %v1633_v16 = vpop.f32.mrb[9].mxu0 }
 0x291   :  { %v1634_v17 = vadd.f32 %v1633_v16, %v1632_v14  ;;  %v1635_v18 = vpop.f32.mrb[10].mxu0 }
 0x292   :  { %v1636_v8 = vpop.f32.mrb[11].mxu0 }
 0x293   :  { %v1253_v4 = vadd.f32 %v1634_v17, %v1121_v15 }
 0x295   :  { %v1258_v10 = vmax.f32 %v1253_v4, 0.0 }
 0x297   :  { %v1259_v6 = vpack.c.bf16 %v1258_v10, %v1258_v10 }
 0x299   :  { %1389 = vmatmul.mubr.bf16.vlgmr.msra.gmra.mrb[8].mxu1 %v1259_v6 }
 0x29a   :  { %1992 = shalt.err (!%p1989_p11)
}
 0x29b   :  { %s1993_s29 = scalar_lea.hbm %s2348_s6, 128 }
 0x29c   :  { %p1994_p12 = scmp.ne.s32.totalorder %s2348_s6, %s1993_s29  ;;  %p1997_p13 = scmp.lt.u32.totalorder %s1993_s29, %s2348_s6 }
 0x29e   :  { %p1999_p0 = pnand %p1997_p13, %p1994_p12 }
 0x2a0   :  { %2002 = shalt.err (!%p1999_p0)
}
 0x2a1   :  { %1411 = dma.vmem_to_hbm [thread:$0]  %s1409_s25, 128, %s2348_s6, [#allocation6]  }
 0x2a2   :  { %s2048_s12 = smov [#allocation13]  }
 0x2a3   :  { %s1418_s4 = sshll.u32 %s2048_s12, 4  ;;  %s1419_s4 = int_to_ptr.vmem [resolvable:$true] %s1418_s4 }
 0x2a4   :  { %s2003_s27 = scalar_lea.vmem %s1419_s4, 128  ;;  %p2008_p2 = scmp.lt.s32.totalorder %s1419_s4, %s1419_s4 }
 0x2a5   :  { %p2004_p1 = scmp.ne.s32.totalorder %s1419_s4, %s2003_s27  ;;  %p2009_p3 = scmp.lt.s32.totalorder %s2003_s27, %s2003_s27 }
 0x2a7   :  { %p2010_p4 = por %p2009_p3, %p2008_p2 }
 0x2a9   :  { %p2011_p5 = pnand %p2010_p4, %p2004_p1 }
 0x36c   :  { %v1390_v19 = vpop.f32.mrb[8].mxu1 }
 0x36d   :  { %v1392_v20 = vpop.f32.mrb[9].mxu1 }
 0x36e   :  { %v1399_v21 = vcombine.low %v1390_v19, %v1392_v20  ;;  %v1394_v22 = vpop.f32.mrb[10].mxu1 }
 0x36f   :  { %v1395_v23 = vpop.f32.mrb[11].mxu1 }
 0x370   :  { %1401 = vst [vmem:[#allocation13] sm:$0xff] %v1399_v21 }
 0x371   :  { %2014 = shalt.err (!%p2011_p5)
}
 0x372   :  { %s2015_s6 = scalar_lea.hbm %s2349_s7, 128 }
 0x373   :  { %p2016_p6 = scmp.ne.s32.totalorder %s2349_s7, %s2015_s6  ;;  %p2019_p7 = scmp.lt.u32.totalorder %s2015_s6, %s2349_s7 }
 0x375   :  { %p2021_p8 = pnand %p2019_p7, %p2016_p6 }
 0x377   :  { %2024 = shalt.err (!%p2021_p8)
}
 0x378   :  { %1421 = dma.vmem_to_hbm [thread:$0]  %s1419_s4, 128, %s2349_s7, [#allocation14]  }
 0x379   :  { %2033 = dma.done.wait [#allocation6], 128  }
 0x37a   :  { %2034 = vsyncadd [#allocation6], 4294967168 }
 0x37b   :  { %2035 = dma.done.wait [#allocation14], 128  }
 0x37c   :  { %2036 = vsyncadd [#allocation14], 4294967168 }
 0x37d   :  { %1428 = vsyncpa [#allocation5], 1 }
 0x37e   :  { %1429 = vsyncpa [#allocation8], 1 }
 0x37f   :  { %1430 = vsyncpa [#allocation11], 1 }
 0x380   :  { %1431 = vsyncpa [#allocation6], 1 }
 0x381   :  { %1432 = vsyncpa [#allocation14], 1 }

</bundles_post_ra>
